<compile_context>
chip_gen: v5e
topology: v5e:2x2
jax: 0.10.0
libtpu: 0.0.40
codegen_flags: <defaults>
</compile_context>

<pallas_src>
import functools

import jax
import jax.numpy as jnp
from jax.experimental import pallas as pl
from jax.experimental.pallas import tpu as pltpu


def _round_up(x, m):
    return (x + m - 1) // m * m


# ---------------------------------------------------------------------------
# Kernel
# ---------------------------------------------------------------------------
def _atconnector_kernel(xt_ref, xv_ref, wq_ref, wkv_ref, s_ref, st_ref,
                        wo_ref, pgb_ref, o_ref, *, output_dim, padded_dim):
    P = padded_dim

    # q/k/v projections: two bf16 MXU matmuls with f32 accumulation.
    # (1/sqrt(d_head) is folded into Wq; q/k/v biases are zero by init.)
    q = jnp.dot(xt_ref[...], wq_ref[...],
                preferred_element_type=jnp.float32)            # [bm, P]
    kv = jnp.dot(xv_ref[...], wkv_ref[...],
                 preferred_element_type=jnp.float32)           # [bm, 2P]
    k = kv[:, :P]                                              # lane-aligned views
    v = kv[:, P:]

    # Per-head dot-product scores via masked matmul with the 0/1 selector S
    # (stays 2-D / lane-resident; no [B,H,d_head] reshapes or XLU relayouts).
    qk = (q * k).astype(s_ref.dtype)                           # bf16 MXU operand
    scores = jnp.dot(qk, s_ref[...],
                     preferred_element_type=jnp.float32)       # [bm, H]

    # Softmax over heads (f32; denominator reciprocal on the EUP).
    m = jnp.max(scores, axis=-1, keepdims=True)
    e = jnp.exp(scores - m)
    denom = jnp.sum(e, axis=-1, keepdims=True)
    attn = e * pl.reciprocal(denom, approx=True)               # [bm, H]

    # Broadcast head weights back over each head's features and weight v.
    attn_full = jnp.dot(attn.astype(st_ref.dtype), st_ref[...],
                        preferred_element_type=jnp.float32)    # [bm, P]
    ctx = (attn_full * v).astype(wo_ref.dtype)                 # [bm, P] bf16

    # Output projection + bias (padded lanes of y stay exactly zero).
    y = jnp.dot(ctx, wo_ref[...],
                preferred_element_type=jnp.float32) + pgb_ref[0:1, :]
    # TODO(synk): nn.Dropout(p=0.1) is treated as inference-mode identity.

    # LayerNorm over the O real features (eps = 1e-5, PyTorch default).
    # Padded lanes are exactly zero, so sums over P lanes divided by O are exact.
    inv_o = 1.0 / output_dim
    mu = jnp.sum(y, axis=-1, keepdims=True) * inv_o
    msq = jnp.sum(y * y, axis=-1, keepdims=True) * inv_o
    var = msq - mu * mu
    yn = (y - mu) * jax.lax.rsqrt(var + 1e-5)
    o_ref[...] = (yn * pgb_ref[1:2, :] + pgb_ref[2:3, :]).astype(o_ref.dtype)


# ---------------------------------------------------------------------------
# One-time parameter packing (do NOT rebuild per forward call)
# ---------------------------------------------------------------------------
def prepare_params(params, *, n_heads, compute_dtype=jnp.bfloat16):
    """Pack module parameters into kernel-ready arrays. Call once and reuse."""
    Dt, O = params["wq"].shape
    Da = params["wk"].shape[0]
    assert O % n_heads == 0
    d_head = O // n_heads
    P = _round_up(O, 128)
    scale = 1.0 / (d_head ** 0.5)

    wq = jnp.zeros((Dt, P), compute_dtype)
    wq = wq.at[:, :O].set((params["wq"] * scale).astype(compute_dtype))

    # [Wk | Wv] side by side, each block padded to P lanes -> aligned k/v split.
    wkv = jnp.zeros((Da, 2 * P), compute_dtype)
    wkv = wkv.at[:, :O].set(params["wk"].astype(compute_dtype))
    wkv = wkv.at[:, P:P + O].set(params["wv"].astype(compute_dtype))

    # 0/1 head selector: S[f, h] = 1 iff (real) feature f belongs to head h.
    feat_head = jnp.arange(P, dtype=jnp.int32) // d_head
    s_mat = (feat_head[:, None] == jnp.arange(n_heads, dtype=jnp.int32)[None, :]
             ).astype(compute_dtype)                           # [P, H]
    st_mat = s_mat.T                                           # [H, P]

    wo = jnp.zeros((P, P), compute_dtype)
    wo = wo.at[:O, :O].set(params["wo"].astype(compute_dtype))

    # Packed epilogue params (f32): row 0 = out bias, 1 = gamma, 2 = beta.
    pgb = jnp.zeros((3, P), jnp.float32)
    pgb = pgb.at[0, :O].set(params["bo"].reshape(O).astype(jnp.float32))
    pgb = pgb.at[1, :O].set(params["gamma"].reshape(O).astype(jnp.float32))
    pgb = pgb.at[2, :O].set(params["beta"].reshape(O).astype(jnp.float32))

    return {"wq": wq, "wkv": wkv, "s": s_mat, "st": st_mat, "wo": wo,
            "pgb": pgb, "n_heads": n_heads, "output_dim": O, "padded_dim": P,
            "dim_text": Dt, "dim_audio": Da}


# ---------------------------------------------------------------------------
# Generation-aware tiling
# ---------------------------------------------------------------------------
def _device_profile():
    """(cores sharing the parallel grid axis, per-call VMEM budget, limit cap)."""
    try:
        kind = jax.devices()[0].device_kind.lower()
    except Exception:
        kind = ""
    if "v7" in kind:                       # 2 TensorCores, 64 MiB physical VMEM
        return 2, 40 << 20, 56 << 20
    return 1, 80 << 20, 100 << 20          # v5e / v6e: 1 TC, 128 MiB VMEM


def _vmem_bytes(bb, Dt, Da, P, H, w_itemsize=2):
    # Grid-invariant weights (assume double-buffered to stay conservative)
    weights = 2 * ((Dt * P + Da * 2 * P + 2 * P * H + P * P) * w_itemsize
                   + 3 * P * 4)
    # Double-buffered per-step I/O tiles (bf16 inputs, f32 output)
    tiles = 2 * bb * ((Dt + Da) * w_itemsize + P * 4)
    return weights + tiles


def _choose_block_b(B, bytes_fn, num_tc, budget):
    cands = sorted({d for d in range(8, B + 1, 8) if B % d == 0} | {B})
    fitting = [c for c in cands if bytes_fn(c) <= budget] or [cands[0]]
    if num_tc >= 2:
        # v7x: prefer the biggest tile giving an even, >=2-step parallel grid
        balanced = [c for c in fitting
                    if B // c >= num_tc and (B // c) % num_tc == 0]
        if balanced:
            return max(balanced)
    # single-TC: biggest fitting tile -> fewest grid steps, least overhead
    return max(fitting)


# ---------------------------------------------------------------------------
# Forward wrapper
# ---------------------------------------------------------------------------
def atconnector_forward(x_text, x_video, prepared, *, block_b=None):
    B, Dt = x_text.shape
    Bv, Da = x_video.shape
    assert B == Bv
    assert Dt == prepared["dim_text"] and Da == prepared["dim_audio"]
    O, P, H = prepared["output_dim"], prepared["padded_dim"], prepared["n_heads"]
    cdt = prepared["wq"].dtype

    num_tc, budget, vmem_cap = _device_profile()
    bytes_fn = lambda bb: _vmem_bytes(bb, Dt, Da, P, H)
    if block_b is None:
        block_b = _choose_block_b(B, bytes_fn, num_tc, budget)
    assert B % block_b == 0
    vmem_limit = int(min(vmem_cap, max(32 << 20, bytes_fn(block_b) + (8 << 20))))

    xt = x_text.astype(cdt)
    xv = x_video.astype(cdt)

    kernel = functools.partial(_atconnector_kernel, output_dim=O, padded_dim=P)
    full = lambda shape: pl.BlockSpec(shape, lambda i: (0, 0))

    cost = pl.CostEstimate(
        flops=2 * B * (Dt * P + Da * 2 * P + 2 * P * H + P * P),
        transcendentals=B * (H + 3),
        bytes_accessed=2 * B * (Dt + Da) + 4 * B * P
        + 2 * (Dt * P + Da * 2 * P + 2 * P * H + P * P) + 4 * 3 * P,
    )

    out = pl.pallas_call(
        kernel,
        out_shape=jax.ShapeDtypeStruct((B, P), jnp.float32),
        grid_spec=pltpu.PrefetchScalarGridSpec(
            num_scalar_prefetch=0,
            grid=(B // block_b,),
            in_specs=[
                pl.BlockSpec((block_b, Dt), lambda i: (i, 0)),   # x_text tile
                pl.BlockSpec((block_b, Da), lambda i: (i, 0)),   # x_video tile
                full((Dt, P)),        # Wq (1/sqrt(d_head) folded, bf16, padded)
                full((Da, 2 * P)),    # [Wk | Wv] (bf16, padded)
                full((P, H)),         # head-sum selector S
                full((H, P)),         # S.T
                full((P, P)),         # Wo (bf16, zero-padded)
                full((3, P)),         # packed [bo; gamma; beta] (f32)
            ],
            out_specs=pl.BlockSpec((block_b, P), lambda i: (i, 0)),
        ),
        compiler_params=pltpu.CompilerParams(
            dimension_semantics=("parallel",),
            vmem_limit_bytes=vmem_limit),
        cost_estimate=cost,
    )(xt, xv, prepared["wq"], prepared["wkv"], prepared["s"], prepared["st"],
      prepared["wo"], prepared["pgb"])

    # Kernel stores lane-dense [*, P] rows; drop the zero padding (no-op if
    # O is already a multiple of 128).
    return out[:, :O] if P != O else out


# ---------------------------------------------------------------------------
# Parameter init (matches the PyTorch module's _init_weights) + f32 reference
# ---------------------------------------------------------------------------
def init_params(key, dim_text, dim_audio, output_dim):
    """Weights stored as [in_features, out_features] (transpose of nn.Linear).
    q/k/v: xavier_uniform weights, zero biases (omitted).
    out Linear: uniform(+-1/sqrt(fan_in)) weight + bias; LayerNorm gamma=1, beta=0."""
    kq, kk, kv, kw, kb = jax.random.split(key, 5)

    def xavier(k, fan_in, fan_out):
        bound = (6.0 / (fan_in + fan_out)) ** 0.5
        return jax.random.uniform(k, (fan_in, fan_out), jnp.float32, -bound, bound)

    bound_o = 1.0 / (output_dim ** 0.5)
    return {
        "wq": xavier(kq, dim_text, output_dim),
        "wk": xavier(kk, dim_audio, output_dim),
        "wv": xavier(kv, dim_audio, output_dim),
        "wo": jax.random.uniform(kw, (output_dim, output_dim), jnp.float32,
                                 -bound_o, bound_o),
        "bo": jax.random.uniform(kb, (1, output_dim), jnp.float32,
                                 -bound_o, bound_o),
        "gamma": jnp.ones((1, output_dim), jnp.float32),
        "beta": jnp.zeros((1, output_dim), jnp.float32),
    }


def _reference_forward(x_text, x_video, params, *, n_heads):
    """Pure-JAX f32 reference of the PyTorch forward (eval mode)."""
    O = params["wq"].shape[1]
    d_head = O // n_heads
    B = x_text.shape[0]
    q = (x_text @ params["wq"]).reshape(B, n_heads, d_head)
    k = (x_video @ params["wk"]).reshape(B, n_heads, d_head)
    v = (x_video @ params["wv"]).reshape(B, n_heads, d_head)
    scores = (q * k).sum(-1) / (d_head ** 0.5)
    attn = jax.nn.softmax(scores, axis=-1)
    ctx = (attn[..., None] * v).reshape(B, O)
    y = ctx @ params["wo"] + params["bo"].reshape(1, O)
    mu = y.mean(-1, keepdims=True)
    var = jnp.mean((y - mu) ** 2, axis=-1, keepdims=True)
    yn = (y - mu) / jnp.sqrt(var + 1e-5)
    return yn * params["gamma"].reshape(1, O) + params["beta"].reshape(1, O)


if __name__ == "__main__":
    B = 16
    n_heads = 4
    dim_text = 32
    dim_audio = 48
    output_dim = 32

    key = jax.random.PRNGKey(0)
    k_xt, k_xv, k_p = jax.random.split(key, 3)
    x_text = jax.random.normal(k_xt, (B, dim_text), jnp.float32)
    x_video = jax.random.normal(k_xv, (B, dim_audio), jnp.float32)
    params = init_params(k_p, dim_text, dim_audio, output_dim)

    prepared = prepare_params(params, n_heads=n_heads)   # one-time packing
    out = atconnector_forward(x_text, x_video, prepared)
    jax.block_until_ready(out)

    assert out.shape == (B, output_dim)
    assert bool(jnp.all(jnp.isfinite(out)))

    ref = _reference_forward(x_text, x_video, params, n_heads=n_heads)
    max_err = float(jnp.max(jnp.abs(out - ref)))
    assert max_err < 1.5e-1, f"max abs error vs f32 reference too large: {max_err}"
    print("KERNEL_OK")
</pallas_src>

<mosaic_0001>
module attributes {stable_mosaic.version = 11 : i64} {
  func.func @_atconnector_kernel(%arg0: i32, %arg1: memref<16x32xbf16, #tpu.memory_space<vmem>>, %arg2: memref<16x48xbf16, #tpu.memory_space<vmem>>, %arg3: memref<32x128xbf16, #tpu.memory_space<vmem>>, %arg4: memref<48x256xbf16, #tpu.memory_space<vmem>>, %arg5: memref<128x4xbf16, #tpu.memory_space<vmem>>, %arg6: memref<4x128xbf16, #tpu.memory_space<vmem>>, %arg7: memref<128x128xbf16, #tpu.memory_space<vmem>>, %arg8: memref<3x128xf32, #tpu.memory_space<vmem>>, %arg9: memref<16x128xf32, #tpu.memory_space<vmem>>) attributes {dimension_semantics = [#tpu.dimension_semantics<parallel>], iteration_bounds = array<i64: 1>, scalar_prefetch = 0 : i64, scratch_operands = 0 : i64, tpu.core_type = #tpu.core_type<tc>, window_params = [{transform_indices = @transform_0, window_bounds = array<i64: 16, 32>}, {transform_indices = @transform_1, window_bounds = array<i64: 16, 48>}, {pipeline_mode = #tpu.pipeline_mode<synchronous>, transform_indices = @transform_2, window_bounds = array<i64: 32, 128>}, {pipeline_mode = #tpu.pipeline_mode<synchronous>, transform_indices = @transform_3, window_bounds = array<i64: 48, 256>}, {pipeline_mode = #tpu.pipeline_mode<synchronous>, transform_indices = @transform_4, window_bounds = array<i64: 128, 4>}, {pipeline_mode = #tpu.pipeline_mode<synchronous>, transform_indices = @transform_5, window_bounds = array<i64: 4, 128>}, {pipeline_mode = #tpu.pipeline_mode<synchronous>, transform_indices = @transform_6, window_bounds = array<i64: 128, 128>}, {pipeline_mode = #tpu.pipeline_mode<synchronous>, transform_indices = @transform_7, window_bounds = array<i64: 3, 128>}, {transform_indices = @transform_8, window_bounds = array<i64: 16, 128>}]} {
    %c0 = arith.constant 0 : index
    %c0_0 = arith.constant 0 : index
    %0 = vector.load %arg1[%c0, %c0_0] : memref<16x32xbf16, #tpu.memory_space<vmem>>, vector<16x32xbf16>
    %c0_1 = arith.constant 0 : index
    %c0_2 = arith.constant 0 : index
    %1 = vector.load %arg3[%c0_1, %c0_2] : memref<32x128xbf16, #tpu.memory_space<vmem>>, vector<32x128xbf16>
    %cst = arith.constant dense<0.000000e+00> : vector<16x128xf32>
    %2 = tpu.matmul %0, %1, %cst {dimension_numbers = #tpu.dot_dimension_numbers<[1], [0], [0], [1], [0, 0, 1, 1], [], []>} : vector<16x32xbf16>, vector<32x128xbf16>, vector<16x128xf32> -> vector<16x128xf32>
    %c0_3 = arith.constant 0 : index
    %c0_4 = arith.constant 0 : index
    %3 = vector.load %arg2[%c0_3, %c0_4] : memref<16x48xbf16, #tpu.memory_space<vmem>>, vector<16x48xbf16>
    %c0_5 = arith.constant 0 : index
    %c0_6 = arith.constant 0 : index
    %4 = vector.load %arg4[%c0_5, %c0_6] : memref<48x256xbf16, #tpu.memory_space<vmem>>, vector<48x256xbf16>
    %cst_7 = arith.constant dense<0.000000e+00> : vector<16x256xf32>
    %5 = tpu.matmul %3, %4, %cst_7 {dimension_numbers = #tpu.dot_dimension_numbers<[1], [0], [0], [1], [0, 0, 1, 1], [], []>} : vector<16x48xbf16>, vector<48x256xbf16>, vector<16x256xf32> -> vector<16x256xf32>
    %6 = vector.extract_strided_slice %5 {offsets = [0, 0], sizes = [16, 128], strides = [1, 1]} : vector<16x256xf32> to vector<16x128xf32>
    %7 = vector.extract_strided_slice %5 {offsets = [0, 128], sizes = [16, 128], strides = [1, 1]} : vector<16x256xf32> to vector<16x128xf32>
    %8 = arith.mulf %2, %6 : vector<16x128xf32>
    %9 = arith.truncf %8 : vector<16x128xf32> to vector<16x128xbf16>
    %c0_8 = arith.constant 0 : index
    %c0_9 = arith.constant 0 : index
    %10 = vector.load %arg5[%c0_8, %c0_9] : memref<128x4xbf16, #tpu.memory_space<vmem>>, vector<128x4xbf16>
    %cst_10 = arith.constant dense<0.000000e+00> : vector<16x4xf32>
    %11 = tpu.matmul %9, %10, %cst_10 {dimension_numbers = #tpu.dot_dimension_numbers<[1], [0], [0], [1], [0, 0, 1, 1], [], []>} : vector<16x128xbf16>, vector<128x4xbf16>, vector<16x4xf32> -> vector<16x4xf32>
    %cst_11 = arith.constant dense<0xFF800000> : vector<16xf32>
    %12 = vector.multi_reduction <maximumf>, %11, %cst_11 [1] : vector<16x4xf32> to vector<16xf32>
    %13 = vector.shape_cast %12 : vector<16xf32> to vector<16x1xf32>
    %14 = vector.broadcast %13 : vector<16x1xf32> to vector<16x4xf32>
    %15 = arith.subf %11, %14 : vector<16x4xf32>
    %16 = math.exp %15 : vector<16x4xf32>
    %cst_12 = arith.constant dense<0.000000e+00> : vector<16xf32>
    %17 = vector.multi_reduction <add>, %16, %cst_12 [1] : vector<16x4xf32> to vector<16xf32>
    %18 = vector.shape_cast %17 : vector<16xf32> to vector<16x1xf32>
    %19 = tpu.reciprocal %18 {approx = true} : vector<16x1xf32> -> vector<16x1xf32>
    %20 = vector.broadcast %19 : vector<16x1xf32> to vector<16x4xf32>
    %21 = arith.mulf %16, %20 : vector<16x4xf32>
    %22 = arith.truncf %21 : vector<16x4xf32> to vector<16x4xbf16>
    %c0_13 = arith.constant 0 : index
    %c0_14 = arith.constant 0 : index
    %23 = vector.load %arg6[%c0_13, %c0_14] : memref<4x128xbf16, #tpu.memory_space<vmem>>, vector<4x128xbf16>
    %cst_15 = arith.constant dense<0.000000e+00> : vector<16x128xf32>
    %24 = tpu.matmul %22, %23, %cst_15 {dimension_numbers = #tpu.dot_dimension_numbers<[1], [0], [0], [1], [0, 0, 1, 1], [], []>} : vector<16x4xbf16>, vector<4x128xbf16>, vector<16x128xf32> -> vector<16x128xf32>
    %25 = arith.mulf %24, %7 : vector<16x128xf32>
    %26 = arith.truncf %25 : vector<16x128xf32> to vector<16x128xbf16>
    %c0_16 = arith.constant 0 : index
    %c0_17 = arith.constant 0 : index
    %27 = vector.load %arg7[%c0_16, %c0_17] : memref<128x128xbf16, #tpu.memory_space<vmem>>, vector<128x128xbf16>
    %cst_18 = arith.constant dense<0.000000e+00> : vector<16x128xf32>
    %28 = tpu.matmul %26, %27, %cst_18 {dimension_numbers = #tpu.dot_dimension_numbers<[1], [0], [0], [1], [0, 0, 1, 1], [], []>} : vector<16x128xbf16>, vector<128x128xbf16>, vector<16x128xf32> -> vector<16x128xf32>
    %c0_19 = arith.constant 0 : index
    %c0_20 = arith.constant 0 : index
    %29 = vector.load %arg8[%c0_19, %c0_20] : memref<3x128xf32, #tpu.memory_space<vmem>>, vector<1x128xf32>
    %30 = vector.broadcast %29 : vector<1x128xf32> to vector<16x128xf32>
    %31 = arith.addf %28, %30 : vector<16x128xf32>
    %cst_21 = arith.constant dense<0.000000e+00> : vector<16xf32>
    %32 = vector.multi_reduction <add>, %31, %cst_21 [1] : vector<16x128xf32> to vector<16xf32>
    %33 = vector.shape_cast %32 : vector<16xf32> to vector<16x1xf32>
    %cst_22 = arith.constant 3.125000e-02 : f32
    %34 = vector.broadcast %cst_22 : f32 to vector<16x1xf32>
    %35 = arith.mulf %33, %34 : vector<16x1xf32>
    %36 = arith.mulf %31, %31 : vector<16x128xf32>
    %cst_23 = arith.constant dense<0.000000e+00> : vector<16xf32>
    %37 = vector.multi_reduction <add>, %36, %cst_23 [1] : vector<16x128xf32> to vector<16xf32>
    %38 = vector.shape_cast %37 : vector<16xf32> to vector<16x1xf32>
    %cst_24 = arith.constant 3.125000e-02 : f32
    %39 = vector.broadcast %cst_24 : f32 to vector<16x1xf32>
    %40 = arith.mulf %38, %39 : vector<16x1xf32>
    %41 = arith.mulf %35, %35 : vector<16x1xf32>
    %42 = arith.subf %40, %41 : vector<16x1xf32>
    %43 = vector.broadcast %35 : vector<16x1xf32> to vector<16x128xf32>
    %44 = arith.subf %31, %43 : vector<16x128xf32>
    %cst_25 = arith.constant 9.99999974E-6 : f32
    %45 = vector.broadcast %cst_25 : f32 to vector<16x1xf32>
    %46 = arith.addf %42, %45 : vector<16x1xf32>
    %47 = math.rsqrt %46 : vector<16x1xf32>
    %48 = vector.broadcast %47 : vector<16x1xf32> to vector<16x128xf32>
    %49 = arith.mulf %44, %48 : vector<16x128xf32>
    %c1 = arith.constant 1 : index
    %c0_26 = arith.constant 0 : index
    %50 = vector.load %arg8[%c1, %c0_26] : memref<3x128xf32, #tpu.memory_space<vmem>>, vector<1x128xf32>
    %51 = vector.broadcast %50 : vector<1x128xf32> to vector<16x128xf32>
    %52 = arith.mulf %49, %51 : vector<16x128xf32>
    %c2 = arith.constant 2 : index
    %c0_27 = arith.constant 0 : index
    %53 = vector.load %arg8[%c2, %c0_27] : memref<3x128xf32, #tpu.memory_space<vmem>>, vector<1x128xf32>
    %54 = vector.broadcast %53 : vector<1x128xf32> to vector<16x128xf32>
    %55 = arith.addf %52, %54 : vector<16x128xf32>
    %c0_28 = arith.constant 0 : index
    %c0_29 = arith.constant 0 : index
    %56 = vector.load %arg9[%c0_28, %c0_29] : memref<16x128xf32, #tpu.memory_space<vmem>>, vector<16x128xf32>
    tpu.vector_store %arg9[%c0_28, %c0_29], %55 {strides = array<i32>} : memref<16x128xf32, #tpu.memory_space<vmem>>, vector<16x128xf32>,
    return
  }
  func.func @transform_0(%arg0: i32) -> (i32, i32) {
    %c0_i32 = arith.constant 0 : i32
    %c0_i32_0 = arith.constant 0 : i32
    return %arg0, %c0_i32 : i32, i32
  }
  func.func @transform_1(%arg0: i32) -> (i32, i32) {
    %c0_i32 = arith.constant 0 : i32
    %c0_i32_0 = arith.constant 0 : i32
    return %arg0, %c0_i32 : i32, i32
  }
  func.func @transform_2(%arg0: i32) -> (i32, i32) {
    %c0_i32 = arith.constant 0 : i32
    %c0_i32_0 = arith.constant 0 : i32
    %c0_i32_1 = arith.constant 0 : i32
    return %c0_i32, %c0_i32_0 : i32, i32
  }
  func.func @transform_3(%arg0: i32) -> (i32, i32) {
    %c0_i32 = arith.constant 0 : i32
    %c0_i32_0 = arith.constant 0 : i32
    %c0_i32_1 = arith.constant 0 : i32
    return %c0_i32, %c0_i32_0 : i32, i32
  }
  func.func @transform_4(%arg0: i32) -> (i32, i32) {
    %c0_i32 = arith.constant 0 : i32
    %c0_i32_0 = arith.constant 0 : i32
    %c0_i32_1 = arith.constant 0 : i32
    return %c0_i32, %c0_i32_0 : i32, i32
  }
  func.func @transform_5(%arg0: i32) -> (i32, i32) {
    %c0_i32 = arith.constant 0 : i32
    %c0_i32_0 = arith.constant 0 : i32
    %c0_i32_1 = arith.constant 0 : i32
    return %c0_i32, %c0_i32_0 : i32, i32
  }
  func.func @transform_6(%arg0: i32) -> (i32, i32) {
    %c0_i32 = arith.constant 0 : i32
    %c0_i32_0 = arith.constant 0 : i32
    %c0_i32_1 = arith.constant 0 : i32
    return %c0_i32, %c0_i32_0 : i32, i32
  }
  func.func @transform_7(%arg0: i32) -> (i32, i32) {
    %c0_i32 = arith.constant 0 : i32
    %c0_i32_0 = arith.constant 0 : i32
    %c0_i32_1 = arith.constant 0 : i32
    return %c0_i32, %c0_i32_0 : i32, i32
  }
  func.func @transform_8(%arg0: i32) -> (i32, i32) {
    %c0_i32 = arith.constant 0 : i32
    %c0_i32_0 = arith.constant 0 : i32
    return %arg0, %c0_i32 : i32, i32
  }
}

</mosaic_0001>

<bundles_post_ra>
// kernel: tpu_custom_call.1
= control target key start
LH: loop header
LB: loop body
LE: loop exit
PB: predicated region body
PF: predicated region fallthrough
CT: control target
= control target key end

     0   :  { %13 = vsyncpa [#allocation3], 0  ;;  %s923_s0 = inlined_call_operand.hbm [shape: bf16[16,32], index: 0, kind: input, shape index: {}]   ;;  %s924_s1 = inlined_call_operand.hbm [shape: bf16[16,48], index: 1, kind: input, shape index: {}]   ;;  %s925_s2 = inlined_call_operand.hbm [shape: bf16[32,128], index: 2, kind: input, shape index: {}]   ;;  %s926_s3 = inlined_call_operand.hbm [shape: bf16[48,256], index: 3, kind: input, shape index: {}]   ;;  %s927_s4 = inlined_call_operand.vmem [shape: bf16[128,4], index: 4, kind: input, shape index: {}]   ;;  %s928_s5 = inlined_call_operand.vmem [shape: bf16[4,128], index: 5, kind: input, shape index: {}]   ;;  %s929_s6 = inlined_call_operand.vmem [shape: bf16[128,128], index: 6, kind: input, shape index: {}]   ;;  %s930_s7 = inlined_call_operand.vmem [shape: f32[3,128], index: 7, kind: input, shape index: {}]   ;;  %s931_s8 = inlined_call_operand.hbm [shape: f32[16,128], index: 8, kind: output, shape index: {}]  }
   0x1   :  { %14 = vsyncpa [#allocation6], 0 }
   0x2   :  { %15 = vsyncpa [#allocation9], 0 }
   0x3   :  { %16 = vsyncpa [#allocation4], 0  ;;  %s34_s29 = sshll.u32 %s924_s1, 4  ;;  %s781_s30 = smov [#allocation5]   ;;  %s35_s29 = int_to_ptr.hbm [resolvable:$true] %s34_s29 }
   0x4   :  { %s36_s9 = sshll.u32 %s781_s30, 4  ;;  %s21_s12 = sshll.u32 %s923_s0, 4  ;;  %s37_s9 = int_to_ptr.vmem [resolvable:$true] %s36_s9  ;;  %s22_s12 = int_to_ptr.hbm [resolvable:$true] %s21_s12 }
   0x5   :  { %s782_s13 = smov 64   ;;  %s783_s14 = smov 4  }
   0x6   :  { %42 = dma.hbm_to_vmem [thread:$0]  %s35_s29, 128, %s37_s9, [#allocation6], %s782_s13, %s782_s13, %s783_s14  }
   0x7   :  { %s784_s15 = smov [#allocation2]   ;;  %s47_s19 = sshll.u32 %s925_s2, 4  ;;  %s48_s19 = int_to_ptr.hbm [resolvable:$true] %s47_s19 }
   0x8   :  { %s23_s16 = sshll.u32 %s784_s15, 4  ;;  %s60_s21 = sshll.u32 %s926_s3, 4  ;;  %s24_s16 = int_to_ptr.vmem [resolvable:$true] %s23_s16  ;;  %s61_s21 = int_to_ptr.hbm [resolvable:$true] %s60_s21 }
   0x9   :  { %29 = dma.hbm_to_vmem [thread:$0]  %s22_s12, 128, %s24_s16, [#allocation3], %s782_s13, %s782_s13, %s783_s14  }
   0xa   :  { %s785_s22 = smov [#allocation7]   ;;  %s786_s0 = smov [#allocation8]  }
   0xb   :  { %s49_s23 = sshll.u32 %s785_s22, 4  ;;  %s62_s24 = sshll.u32 %s786_s0, 4  ;;  %s50_s23 = int_to_ptr.vmem [resolvable:$true] %s49_s23  ;;  %s63_s24 = int_to_ptr.vmem [resolvable:$true] %s62_s24 }
   0xc   :  { %55 = dma.hbm_to_vmem [thread:$0]  %s48_s19, 256, %s50_s23, [#allocation6], %s782_s13, %s782_s13, %s783_s14  }
   0xd   :  { %s787_s25 = smov 128   ;;  %s788_s26 = smov 8  }
   0xe   :  { %68 = dma.hbm_to_vmem [thread:$0]  %s61_s21, 768, %s63_s24, [#allocation9], %s787_s25, %s787_s25, %s788_s26  }
   0xf   :  { %773 = dma.done.wait [#allocation3], 128  }
  0x10   :  { %774 = vsyncadd [#allocation3], 4294967168 }
  0x11   :  { %775 = dma.done.wait [#allocation6], 384  }
  0x12   :  { %776 = vsyncadd [#allocation6], 4294966912 }
  0x13   :  { %777 = dma.done.wait [#allocation9], 768  }
  0x14   :  { %778 = vsyncadd [#allocation9], 4294966528  ;;  %v530_v0 = vld [vmem:[#allocation8 + $0x20] sm:$0xf]  ;;  %v612_v1 = vld [vmem:[#allocation8 + $0x24] sm:$0xf0] }
  0x15   :  { %v605_v2 = vld [vmem:[#allocation7 + $0x8] sm:$0xff]  ;;  %v531_v3 = vor.u32 %v612_v1, %v530_v0  ;;  %v522_v4 = vld [vmem:[#allocation8 + $0x10] sm:$0xf]  ;;  %v514_v8 = vld [vmem:[#allocation8] sm:$0xf]  ;;  %vm117_vm0 = vcmask 261120  }
  0x16   :  { %v610_v5 = vld [vmem:[#allocation8 + $0x14] sm:$0xf0]  ;;  %127 = vmatpush.bf16.msra.mxu0 %v605_v2  ;;  %v604_v6 = vld [vmem:[#allocation7] sm:$0xff]  ;;  %v608_v10 = vld [vmem:[#allocation8 + $0x4] sm:$0xf0]  ;;  %vm178_vm1 = vcmask 392192  }
  0x17   :  { %187 = vmatpush.bf16.msra.mxu2 %v531_v3  ;;  %v523_v7 = vor.u32 %v610_v5, %v522_v4  ;;  %v620_v9 = vld [vmem:[%s927_s4 + $0x38] sm:$0xff]  ;;  %v603_v11 = vld [vmem:[#allocation2] sm:$0xff]  ;;  %v619_v12 = vld [vmem:[%s927_s4 + $0x30] sm:$0xff]  ;;  %v515_v13 = vor.u32 %v608_v10, %v514_v8  ;;  %vm291_vm2 = vcmask 31744   ;;  %vm319_vm3 = vcmask 1041408   ;;  %s789_s16 = smov [#allocation10]  }
  0x18   :  { %277 = vmatpush.bf16.msra.mxu3 %v620_v9  ;;  %v618_v14 = vld [vmem:[%s927_s4 + $0x28] sm:$0xff]  ;;  %v617_v16 = vld [vmem:[%s927_s4 + $0x20] sm:$0xff]  ;;  %v616_v17 = vld [vmem:[%s927_s4 + $0x18] sm:$0xff]  ;;  %s478_s17 = sshll.u32 %s789_s16, 4  ;;  %s480_s19 = sshll.u32 %s931_s8, 4  ;;  %s479_s17 = int_to_ptr.vmem [resolvable:$true] %s478_s17  ;;  %s481_s19 = int_to_ptr.hbm [resolvable:$true] %s480_s19 }
  0x19   :  { %v606_v15 = vld [vmem:[#allocation5] sm:$0xff]  ;;  %v615_v18 = vld [vmem:[%s927_s4 + $0x10] sm:$0xff]  ;;  %v613_v20 = vld [vmem:[%s927_s4] sm:$0xff] }
  0x1a   :  { %128 = vmatpush.bf16.msra.mxu0 %v604_v6  ;;  %v614_v19 = vld [vmem:[%s927_s4 + $0x8] sm:$0xff]  ;;  %v611_v32 = vld [vmem:[#allocation8 + $0x24] sm:$0xf]  ;;  %v609_v34 = vld [vmem:[#allocation8 + $0x14] sm:$0xf] }
  0x1b   :  { %188 = vmatpush.bf16.msra.mxu2 %v523_v7  ;;  %v532_v33 = vld [vmem:[#allocation8 + $0x28] sm:$0xf0]  ;;  %v524_v36 = vld [vmem:[#allocation8 + $0x18] sm:$0xf0]  ;;  %v607_v48 = vld [vmem:[#allocation8 + $0x4] sm:$0xf] }
  0x1c   :  { %278 = vmatpush.bf16.msra.mxu3 %v619_v12  ;;  %v535_v35 = vor.u32 %v611_v32, %v532_v33  ;;  %v527_v37 = vor.u32 %v609_v34, %v524_v36  ;;  %v516_v49 = vld [vmem:[#allocation8 + $0x8] sm:$0xf0]  ;;  %v315_v51 = vld [vmem:[%s928_s5] sm:$0x3]  ;;  %v628_v53 = vld [vmem:[%s929_s6 + $0x38] sm:$0xff] }
  0x1d   :  { %507 = vmatmul.msk.bf16.vlgmr.msra.gmra.mxu0 %vm117_vm0, %v603_v11  ;;  %v519_v50 = vor.u32 %v607_v48, %v516_v49  ;;  %v321_v52 = vsel %vm319_vm3, %v315_v51, 0  ;;  %406 = vmatpush.bf16.msra.mxu1 %v628_v53  ;;  %v627_v54 = vld [vmem:[%s929_s6 + $0x30] sm:$0xff]  ;;  %v626_v55 = vld [vmem:[%s929_s6 + $0x28] sm:$0xff]  ;;  %v625_v63 = vld [vmem:[%s929_s6 + $0x20] sm:$0xff] }
  0x1e   :  { %330 = vmatpush.bf16.msrb.mxu0 %v321_v52  ;;  %v624_v0 = vld [vmem:[%s929_s6 + $0x18] sm:$0xff]  ;;  %v623_v1 = vld [vmem:[%s929_s6 + $0x10] sm:$0xff]  ;;  %v622_v2 = vld [vmem:[%s929_s6 + $0x8] sm:$0xff] }
  0x1f   :  { %189 = vmatpush.bf16.msra.mxu2 %v515_v13  ;;  %v621_v3 = vld [vmem:[%s929_s6] sm:$0xff] }
  0x20   :  { %279 = vmatpush.bf16.msra.mxu3 %v618_v14  ;;  %v638_v11 = vld [vmem:[%s930_s7] ss:$0 sm:$0xff] }
  0x21   :  { %407 = vmatpush.bf16.msra.mxu1 %v627_v54 }
  0x22   :  { %536 = vmatmul.msk.bf16.vlgmr.msra.gmra.mxu2 %vm178_vm1, %v606_v15 }
  0x23   :  { %201 = vmatpush.bf16.msrb.mxu2 %v535_v35 }
  0x24   :  { %280 = vmatpush.bf16.msra.mxu3 %v617_v16 }
  0x25   :  { %408 = vmatpush.bf16.msra.mxu1 %v626_v55 }
  0x27   :  { %202 = vmatpush.bf16.msrb.mxu2 %v527_v37 }
  0x28   :  { %281 = vmatpush.bf16.msra.mxu3 %v616_v17 }
  0x29   :  { %409 = vmatpush.bf16.msra.mxu1 %v625_v63 }
  0x2b   :  { %203 = vmatpush.bf16.msrb.mxu2 %v519_v50 }
  0x2c   :  { %282 = vmatpush.bf16.msra.mxu3 %v615_v18 }
  0x2d   :  { %410 = vmatpush.bf16.msra.mxu1 %v624_v0 }
  0x30   :  { %283 = vmatpush.bf16.msra.mxu3 %v614_v19 }
  0x31   :  { %411 = vmatpush.bf16.msra.mxu1 %v623_v1 }
  0x32   :  { %537 = vmatmul.msk.bf16.vlgmr.msrb.gmra.mxu2 %vm178_vm1, %v606_v15 }
  0x34   :  { %284 = vmatpush.bf16.msra.mxu3 %v613_v20 }
  0x35   :  { %412 = vmatpush.bf16.msra.mxu1 %v622_v2 }
  0x39   :  { %413 = vmatpush.bf16.msra.mxu1 %v621_v3 }
  0x9a   :  { %v130_v21 = vpop.f32.mrf.mxu0 }
  0xa2   :  { %v132_v23 = vpop.f32.mrf.mxu0 }
  0xa5   :  { %v191_v22 = vpop.f32.mrf.mxu2 }
  0xa6   :  { %v210_v25 = vmul.f32 %v191_v22, %v130_v21 }
  0xad   :  { %v193_v24 = vpop.f32.mrf.mxu2 }
  0xae   :  { %v211_v26 = vmul.f32 %v193_v24, %v132_v23 }
  0xb0   :  { %v212_v27 = vpack.c.bf16 %v211_v26, %v210_v25 }
  0xb2   :  { %285 = vmatmul.bf16.vlgmr.msra.gmra.mxu3 %v212_v27 }
  0xb5   :  { %v205_v4 = vpop.f32.mrf.mxu2 }
  0xbd   :  { %v207_v6 = vpop.f32.mrf.mxu2 }
 0x135   :  { %v286_v28 = vpop.f32.mrf.mxu3 }
 0x136   :  { %v292_v29 = vsel %vm291_vm2, %v286_v28, -inf }
 0x137   :  { %293 = vmax.xlane.f32.xlu0 %v292_v29 }
 0x13d   :  { %v288_v30 = vpop.f32.mrf.mxu3 }
 0x13e   :  { %v295_v31 = vsel %vm291_vm2, %v288_v30, -inf }
 0x13f   :  { %296 = vmax.xlane.f32.xlu0 %v295_v31 }
 0x1aa   :  { %v294_v38 = vpop.xlane.xlu0 %293 }
 0x1ab   :  { %v298_v39 = vsub.f32 %v286_v28, %v294_v38 }
 0x1ad   :  { %v300_v40 = vmul.f32 1.442695, %v298_v39 }
 0x1af   :  { %641 = vpow2.f32 %v300_v40 }
 0x1b2   :  { %v297_v41 = vpop.xlane.xlu0 %296 }
 0x1b3   :  { %v299_v42 = vsub.f32 %v288_v30, %v297_v41  ;;  %v639_v41 = vld [vmem:[%s930_s7 + $0x1] ss:$0 sm:$0xff] }
 0x1b5   :  { %v642_v43 = vpop.eup %641  ;;  %v302_v44 = vmul.f32 1.442695, %v299_v42 }
 0x1b6   :  { %v304_v45 = vsel %vm291_vm2, %v642_v43, 0.0 }
 0x1b7   :  { %643 = vpow2.f32 %v302_v44  ;;  %305 = vadd.xlane.f32.xlu1 %v304_v45  ;;  %v640_v45 = vld [vmem:[%s930_s7 + $0x2] ss:$0 sm:$0xff] }
 0x1bd   :  { %v644_v46 = vpop.eup %643 }
 0x1be   :  { %v307_v47 = vsel %vm291_vm2, %v644_v46, 0.0 }
 0x1bf   :  { %308 = vadd.xlane.f32.xlu1 %v307_v47 }
 0x22a   :  { %v306_v56 = vpop.xlane.xlu1 %305 }
 0x22b   :  { %645 = vrcp.f32 %v306_v56 }
 0x231   :  { %v646_v58 = vpop.eup %645 }
 0x232   :  { %v309_v57 = vpop.xlane.xlu1 %308  ;;  %v312_v60 = vmul.f32 %v646_v58, %v642_v43 }
 0x233   :  { %647 = vrcp.f32 %v309_v57 }
 0x239   :  { %v648_v59 = vpop.eup %647 }
 0x23a   :  { %v313_v61 = vmul.f32 %v648_v59, %v644_v46 }
 0x23c   :  { %v314_v62 = vpack.c.bf16 %v313_v61, %v312_v60 }
 0x23e   :  { %570 = vmatmul.msk.bf16.vlgmr.msrb.gmra.mxu0 %vm291_vm2, %v314_v62 }
 0x2bb   :  { %v332_v5 = vpop.f32.mrf.mxu0 }
 0x2bc   :  { %v337_v8 = vmul.f32 %v332_v5, %v205_v4 }
 0x2c3   :  { %v334_v7 = vpop.f32.mrf.mxu0 }
 0x2c4   :  { %v338_v9 = vmul.f32 %v334_v7, %v207_v6 }
 0x2c6   :  { %v339_v10 = vpack.c.bf16 %v338_v9, %v337_v8 }
 0x2c8   :  { %414 = vmatmul.bf16.vlgmr.msra.gmra.mxu1 %v339_v10 }
 0x345   :  { %v415_v12 = vpop.f32.mrf.mxu1 }
 0x346   :  { %v416_v13 = vadd.f32 %v638_v11, %v415_v12 }
 0x348   :  { %420 = vadd.xlane.f32.xlu2 %v416_v13  ;;  %v426_v14 = vmul.f32 %v416_v13, %v416_v13 }
 0x34a   :  { %428 = vadd.xlane.f32.xlu0 %v426_v14 }
 0x34d   :  { %v417_v15 = vpop.f32.mrf.mxu1 }
 0x34e   :  { %v418_v16 = vadd.f32 %v638_v11, %v417_v15 }
 0x350   :  { %422 = vadd.xlane.f32.xlu2 %v418_v16  ;;  %v427_v17 = vmul.f32 %v418_v16, %v418_v16 }
 0x352   :  { %430 = vadd.xlane.f32.xlu1 %v427_v17 }
 0x3bb   :  { %v421_v18 = vpop.xlane.xlu2 %420 }
 0x3bc   :  { %v424_v19 = vmul.f32 0.03125, %v421_v18 }
 0x3bd   :  { %v429_v20 = vpop.xlane.xlu0 %428 }
 0x3be   :  { %v434_v21 = vmul.f32 %v424_v19, %v424_v19  ;;  %v432_v22 = vmul.f32 0.03125, %v429_v20  ;;  %v438_v40 = vsub.f32 %v416_v13, %v424_v19 }
 0x3c0   :  { %v436_v23 = vsub.f32 %v432_v22, %v434_v21 }
 0x3c2   :  { %v440_v24 = vadd.f32 1e-05, %v436_v23 }
 0x3c3   :  { %v423_v25 = vpop.xlane.xlu2 %422 }
 0x3c4   :  { %649 = vrsqrt.f32 %v440_v24  ;;  %v425_v26 = vmul.f32 0.03125, %v423_v25  ;;  %vm448_vm5 = vweird.f32 %v440_v24 }
 0x3c5   :  { %v431_v27 = vpop.xlane.xlu1 %430 }
 0x3c6   :  { %v435_v28 = vmul.f32 %v425_v26, %v425_v26  ;;  %v433_v29 = vmul.f32 0.03125, %v431_v27  ;;  %v439_v51 = vsub.f32 %v418_v16, %v425_v26 }
 0x3c8   :  { %v437_v30 = vsub.f32 %v433_v29, %v435_v28 }
 0x3ca   :  { %v650_v31 = vpop.eup %649  ;;  %v441_v32 = vadd.f32 1e-05, %v437_v30 }
 0x3cb   :  { %v443_v33 = vmul.f32 %v650_v31, %v440_v24  ;;  %vm449_vm4 = vweird.f32 %v650_v31 }
 0x3cc   :  { %651 = vrsqrt.f32 %v441_v32  ;;  %vm450_vm6 = vmor %vm448_vm5, %vm449_vm4  ;;  %vm458_vm8 = vweird.f32 %v441_v32 }
 0x3cd   :  { %v444_v34 = vmul.f32 %v650_v31, %v443_v33 }
 0x3cf   :  { %v445_v35 = vmul.f32 0.5, %v444_v34 }
 0x3d1   :  { %v446_v36 = vsub.f32 1.5, %v445_v35 }
 0x3d2   :  { %v652_v37 = vpop.eup %651 }
 0x3d3   :  { %v447_v38 = vmul.f32 %v650_v31, %v446_v36  ;;  %v453_v39 = vmul.f32 %v652_v37, %v441_v32  ;;  %vm459_vm7 = vweird.f32 %v652_v37 }
 0x3d4   :  { %vm460_vm9 = vmor %vm458_vm8, %vm459_vm7 }
 0x3d5   :  { %v451_v42 = vsel %vm450_vm6, %v650_v31, %v447_v38  ;;  %v454_v43 = vmul.f32 %v652_v37, %v453_v39 }
 0x3d6   :  { %v462_v44 = vmul.f32 %v451_v42, %v438_v40 }
 0x3d7   :  { %v455_v46 = vmul.f32 0.5, %v454_v43 }
 0x3d8   :  { %v466_v47 = vmul.f32 %v639_v41, %v462_v44 }
 0x3d9   :  { %v456_v48 = vsub.f32 1.5, %v455_v46 }
 0x3da   :  { %v470_v49 = vadd.f32 %v640_v45, %v466_v47 }
 0x3db   :  { %v457_v50 = vmul.f32 %v652_v37, %v456_v48 }
 0x3dc   :  { %472 = vst [vmem:[#allocation10] sm:$0xff] %v470_v49 }
 0x3dd   :  { %v461_v52 = vsel %vm460_vm9, %v652_v37, %v457_v50 }
 0x3de   :  { %v463_v53 = vmul.f32 %v461_v52, %v439_v51 }
 0x3e0   :  { %v467_v54 = vmul.f32 %v639_v41, %v463_v53 }
 0x3e2   :  { %v471_v55 = vadd.f32 %v640_v45, %v467_v54 }
 0x3e4   :  { %473 = vst [vmem:[#allocation10 + $0x8] sm:$0xff] %v471_v55 }
 0x3e5   :  { %486 = dma.vmem_to_hbm [thread:$0]  %s479_s17, 256, %s481_s19, [#allocation4], %s787_s25, %s787_s25, %s788_s26  }
 0x3e6   :  { %779 = dma.done.wait [#allocation4], 256  }
 0x3e7   :  { %780 = vsyncadd [#allocation4], 4294967040 }
 0x3e8   :  { %491 = vsyncpa [#allocation3], 1 }
 0x3e9   :  { %492 = vsyncpa [#allocation6], 1 }
 0x3ea   :  { %493 = vsyncpa [#allocation9], 1 }
 0x3eb   :  { %494 = vsyncpa [#allocation4], 1 }

</bundles_post_ra>
